<compile_context>
chip_gen: v7x
topology: tpu7x:2x2x1
jax: 0.10.0
libtpu: 0.0.40
codegen_flags: <defaults>
</compile_context>

<pallas_src>
import jax
import jax.numpy as jnp
from jax.experimental import pallas as pl
from jax.experimental.pallas import tpu as pltpu


def _round_up(a: int, m: int) -> int:
    return ((a + m - 1) // m) * m


def consistency_kernel(x_ref, w1_ref, b1_ref, drop_ref, w2_ref, b2_ref, o_ref):
    # layer1: (TB, F) @ (F, H) on the MXU (bf16 in, f32 accumulate) + bias.
    h = jnp.dot(x_ref[...], w1_ref[...], preferred_element_type=jnp.float32)
    h = h + b1_ref[...]                      # (TB, H) + (1, H)

    # F.dropout(x, 0.5), training=True: multiply by pre-scaled keep mask
    # (values are 0.0 or 2.0), generated in the wrapper.
    h = h * drop_ref[...]

    # ReLU
    h = jnp.maximum(h, 0.0)

    # layer2: (H -> 1) GEMV done as VALU multiply + XLU lane reduction
    # instead of an MXU matmul with N=1 (which would use 1/256 of the MXU).
    y = jnp.sum(h * w2_ref[...], axis=-1, keepdims=True) + b2_ref[...]

    # sigmoid + store.  (TODO(synk): output is a (TB, 1) column -> masked
    # vst; a lane-dense layout would need an in-kernel transpose, skipped at
    # these sizes.)
    o_ref[...] = jax.nn.sigmoid(y).astype(o_ref.dtype)


def consistency_model(x, w1, b1, w2, b2, key, *, block_b=512):
    """Forward pass.

    x : (B, F) f32       w1: (F, H) f32   b1: (H,) f32
    w2: (H, 1) f32       b2: (1,)  f32    key: jax PRNG key for dropout.
    Returns (B, 1) f32 in [0, 1].
    """
    B, F = x.shape
    H = w1.shape[1]

    # Batch tile: multiple of 8 sublanes, aim for a few hundred rows.
    TB = min(block_b, _round_up(B, 8))
    Bp = _round_up(B, TB)
    if Bp != B:
        x = jnp.pad(x, ((0, Bp - B), (0, 0)))

    # Training-mode dropout mask, pre-scaled by 1/(1-p) = 2.0.
    keep = jax.random.bernoulli(key, 0.5, (Bp, H))
    drop_scale = keep.astype(jnp.float32) * 2.0

    # bf16 MXU inputs; elementwise path stays f32.
    x_bf16 = x.astype(jnp.bfloat16)
    w1_bf16 = w1.astype(jnp.bfloat16)
    b1_row = b1.reshape(1, H).astype(jnp.float32)
    w2_row = w2.reshape(1, H).astype(jnp.float32)   # lane-dense row for the reduction
    b2_mat = b2.reshape(1, 1).astype(jnp.float32)

    grid = (Bp // TB,)

    out = pl.pallas_call(
        consistency_kernel,
        out_shape=jax.ShapeDtypeStruct((Bp, 1), jnp.float32),
        grid=grid,
        in_specs=[
            pl.BlockSpec((TB, F), lambda i: (i, 0)),   # x tile
            pl.BlockSpec((F, H), lambda i: (0, 0)),    # W1 (VMEM-resident)
            pl.BlockSpec((1, H), lambda i: (0, 0)),    # b1
            pl.BlockSpec((TB, H), lambda i: (i, 0)),   # dropout scale tile
            pl.BlockSpec((1, H), lambda i: (0, 0)),    # W2 as row
            pl.BlockSpec((1, 1), lambda i: (0, 0)),    # b2
        ],
        out_specs=pl.BlockSpec((TB, 1), lambda i: (i, 0)),
        compiler_params=pltpu.CompilerParams(
            dimension_semantics=("parallel",)),
    )(x_bf16, w1_bf16, b1_row, drop_scale, w2_row, b2_mat)

    return out[:B]


def init_params(key, feature_dim):
    """Matches PyTorch nn.Linear default init U(-1/sqrt(in), 1/sqrt(in))."""
    hidden = feature_dim * 2
    k1, k2, k3, k4 = jax.random.split(key, 4)
    bound1 = 1.0 / jnp.sqrt(feature_dim)
    bound2 = 1.0 / jnp.sqrt(hidden)
    w1 = jax.random.uniform(k1, (feature_dim, hidden), jnp.float32, -bound1, bound1)
    b1 = jax.random.uniform(k2, (hidden,), jnp.float32, -bound1, bound1)
    w2 = jax.random.uniform(k3, (hidden, 1), jnp.float32, -bound2, bound2)
    b2 = jax.random.uniform(k4, (1,), jnp.float32, -bound2, bound2)
    return w1, b1, w2, b2


if __name__ == "__main__":
    feature_dim = 32
    batch = 8

    key = jax.random.PRNGKey(0)
    kx, kp, kd = jax.random.split(key, 3)
    x = jax.random.normal(kx, (batch, feature_dim), dtype=jnp.float32)
    w1, b1, w2, b2 = init_params(kp, feature_dim)

    out = consistency_model(x, w1, b1, w2, b2, kd)
    out = jax.block_until_ready(out)

    assert out.shape == (batch, 1), out.shape
    assert bool(jnp.all((out >= 0.0) & (out <= 1.0)))
    assert bool(jnp.all(jnp.isfinite(out)))
    print("KERNEL_OK")
</pallas_src>

<mosaic_0001>
module attributes {stable_mosaic.version = 11 : i64} {
  func.func @consistency_kernel(%arg0: i32, %arg1: memref<8x32xbf16, #tpu.memory_space<vmem>>, %arg2: memref<32x64xbf16, #tpu.memory_space<vmem>>, %arg3: memref<1x64xf32, #tpu.memory_space<vmem>>, %arg4: memref<8x64xf32, #tpu.memory_space<vmem>>, %arg5: memref<1x64xf32, #tpu.memory_space<vmem>>, %arg6: memref<1x1xf32, #tpu.memory_space<vmem>>, %arg7: memref<8x1xf32, #tpu.memory_space<vmem>>) attributes {dimension_semantics = [#tpu.dimension_semantics<parallel>], iteration_bounds = array<i64: 1>, scalar_prefetch = 0 : i64, scratch_operands = 0 : i64, tpu.core_type = #tpu.core_type<tc>, window_params = [{transform_indices = @transform_0, window_bounds = array<i64: 8, 32>}, {pipeline_mode = #tpu.pipeline_mode<synchronous>, transform_indices = @transform_1, window_bounds = array<i64: 32, 64>}, {pipeline_mode = #tpu.pipeline_mode<synchronous>, transform_indices = @transform_2, window_bounds = array<i64: 1, 64>}, {transform_indices = @transform_3, window_bounds = array<i64: 8, 64>}, {pipeline_mode = #tpu.pipeline_mode<synchronous>, transform_indices = @transform_4, window_bounds = array<i64: 1, 64>}, {pipeline_mode = #tpu.pipeline_mode<synchronous>, transform_indices = @transform_5, window_bounds = array<i64: 1, 1>}, {transform_indices = @transform_6, window_bounds = array<i64: 8, 1>}]} {
    %c0 = arith.constant 0 : index
    %c0_0 = arith.constant 0 : index
    %0 = vector.load %arg1[%c0, %c0_0] : memref<8x32xbf16, #tpu.memory_space<vmem>>, vector<8x32xbf16>
    %c0_1 = arith.constant 0 : index
    %c0_2 = arith.constant 0 : index
    %1 = vector.load %arg2[%c0_1, %c0_2] : memref<32x64xbf16, #tpu.memory_space<vmem>>, vector<32x64xbf16>
    %cst = arith.constant dense<0.000000e+00> : vector<8x64xf32>
    %2 = tpu.matmul %0, %1, %cst {dimension_numbers = #tpu.dot_dimension_numbers<[1], [0], [0], [1], [0, 0, 1, 1], [], []>} : vector<8x32xbf16>, vector<32x64xbf16>, vector<8x64xf32> -> vector<8x64xf32>
    %c0_3 = arith.constant 0 : index
    %c0_4 = arith.constant 0 : index
    %3 = vector.load %arg3[%c0_3, %c0_4] : memref<1x64xf32, #tpu.memory_space<vmem>>, vector<1x64xf32>
    %4 = vector.broadcast %3 : vector<1x64xf32> to vector<8x64xf32>
    %5 = arith.addf %2, %4 : vector<8x64xf32>
    %c0_5 = arith.constant 0 : index
    %c0_6 = arith.constant 0 : index
    %6 = vector.load %arg4[%c0_5, %c0_6] : memref<8x64xf32, #tpu.memory_space<vmem>>, vector<8x64xf32>
    %7 = arith.mulf %5, %6 : vector<8x64xf32>
    %cst_7 = arith.constant 0.000000e+00 : f32
    %8 = vector.broadcast %cst_7 : f32 to vector<8x64xf32>
    %9 = arith.maximumf %7, %8 : vector<8x64xf32>
    %c0_8 = arith.constant 0 : index
    %c0_9 = arith.constant 0 : index
    %10 = vector.load %arg5[%c0_8, %c0_9] : memref<1x64xf32, #tpu.memory_space<vmem>>, vector<1x64xf32>
    %11 = vector.broadcast %10 : vector<1x64xf32> to vector<8x64xf32>
    %12 = arith.mulf %9, %11 : vector<8x64xf32>
    %cst_10 = arith.constant dense<0.000000e+00> : vector<8xf32>
    %13 = vector.multi_reduction <add>, %12, %cst_10 [1] : vector<8x64xf32> to vector<8xf32>
    %14 = vector.shape_cast %13 : vector<8xf32> to vector<8x1xf32>
    %c0_11 = arith.constant 0 : index
    %c0_12 = arith.constant 0 : index
    %15 = vector.load %arg6[%c0_11, %c0_12] : memref<1x1xf32, #tpu.memory_space<vmem>>, vector<1x1xf32>
    %16 = vector.broadcast %15 : vector<1x1xf32> to vector<8x1xf32>
    %17 = arith.addf %14, %16 : vector<8x1xf32>
    %18 = arith.negf %17 : vector<8x1xf32>
    %19 = math.exp %18 : vector<8x1xf32>
    %cst_13 = arith.constant 1.000000e+00 : f32
    %20 = vector.broadcast %cst_13 : f32 to vector<8x1xf32>
    %21 = arith.addf %20, %19 : vector<8x1xf32>
    %22 = arith.divf %20, %21 : vector<8x1xf32>
    %c0_14 = arith.constant 0 : index
    %c0_15 = arith.constant 0 : index
    %23 = vector.load %arg7[%c0_14, %c0_15] : memref<8x1xf32, #tpu.memory_space<vmem>>, vector<8x1xf32>
    tpu.vector_store %arg7[%c0_14, %c0_15], %22 {strides = array<i32>} : memref<8x1xf32, #tpu.memory_space<vmem>>, vector<8x1xf32>,
    return
  }
  func.func @transform_0(%arg0: i32) -> (i32, i32) {
    %c0_i32 = arith.constant 0 : i32
    %c0_i32_0 = arith.constant 0 : i32
    return %arg0, %c0_i32 : i32, i32
  }
  func.func @transform_1(%arg0: i32) -> (i32, i32) {
    %c0_i32 = arith.constant 0 : i32
    %c0_i32_0 = arith.constant 0 : i32
    %c0_i32_1 = arith.constant 0 : i32
    return %c0_i32, %c0_i32_0 : i32, i32
  }
  func.func @transform_2(%arg0: i32) -> (i32, i32) {
    %c0_i32 = arith.constant 0 : i32
    %c0_i32_0 = arith.constant 0 : i32
    %c0_i32_1 = arith.constant 0 : i32
    return %c0_i32, %c0_i32_0 : i32, i32
  }
  func.func @transform_3(%arg0: i32) -> (i32, i32) {
    %c0_i32 = arith.constant 0 : i32
    %c0_i32_0 = arith.constant 0 : i32
    return %arg0, %c0_i32 : i32, i32
  }
  func.func @transform_4(%arg0: i32) -> (i32, i32) {
    %c0_i32 = arith.constant 0 : i32
    %c0_i32_0 = arith.constant 0 : i32
    %c0_i32_1 = arith.constant 0 : i32
    return %c0_i32, %c0_i32_0 : i32, i32
  }
  func.func @transform_5(%arg0: i32) -> (i32, i32) {
    %c0_i32 = arith.constant 0 : i32
    %c0_i32_0 = arith.constant 0 : i32
    %c0_i32_1 = arith.constant 0 : i32
    return %c0_i32, %c0_i32_0 : i32, i32
  }
  func.func @transform_6(%arg0: i32) -> (i32, i32) {
    %c0_i32 = arith.constant 0 : i32
    %c0_i32_0 = arith.constant 0 : i32
    return %arg0, %c0_i32 : i32, i32
  }
}

</mosaic_0001>

<bundles_post_ra>
// kernel: tpu_custom_call.1
= control target key start
LH: loop header
LB: loop body
LE: loop exit
PB: predicated region body
PF: predicated region fallthrough
CT: control target
= control target key end

     0   :  { %s322_s0 = inlined_call_operand.hbm [shape: bf16[8,32], index: 0, kind: input, shape index: {}]   ;;  %s323_s1 = inlined_call_operand.hbm [shape: bf16[32,64], index: 1, kind: input, shape index: {}]   ;;  %s324_s2 = inlined_call_operand.vmem [shape: f32[1,64], index: 2, kind: input, shape index: {}]   ;;  %s325_s3 = inlined_call_operand.vmem [shape: f32[8,64], index: 3, kind: input, shape index: {}]   ;;  %s326_s4 = inlined_call_operand.vmem [shape: f32[1,64], index: 4, kind: input, shape index: {}]   ;;  %s327_s5 = inlined_call_operand.<no memory space> [shape: f32[1,1], index: 5, kind: input, shape index: {}]   ;;  %s328_s6 = inlined_call_operand.vmem [shape: f32[8,1], index: 6, kind: output, shape index: {}]  }
   0x1   :  { %v11_v0 = vstv %s327_s5 }
   0x2   :  { %12 = vst [vmem:[#allocation2] sm:$0x1] %v11_v0 }
   0x3   :  { %13 = vsyncpa [#allocation4], 0 }
   0x4   :  { %14 = vsyncpa [#allocation6], 0  ;;  %s235_s23 = smov [#allocation3]   ;;  %s236_s25 = smov [#allocation5]  }
   0x5   :  { %s21_s24 = sshll.u32 %s235_s23, 4  ;;  %s30_s26 = sshll.u32 %s236_s25, 4  ;;  %s22_s24 = int_to_ptr.vmem [resolvable:$true] %s21_s24  ;;  %s279_s26 = int_to_ptr.vmem [resolvable:$true] %s30_s26 }
   0x6   :  { %s187_s29 = scalar_lea.hbm %s322_s0, 64 }
   0x7   :  { %p188_p0 = scmp.ne.s32.totalorder %s322_s0, %s187_s29  ;;  %p191_p1 = scmp.lt.u32.totalorder %s187_s29, %s322_s0 }
   0x9   :  { %p193_p2 = pnand %p191_p1, %p188_p0 }
   0xb   :  { %196 = shalt.err (!%p193_p2)
}
   0xc   :  { %s197_s9 = scalar_lea.vmem %s22_s24, 64  ;;  %p202_p4 = scmp.lt.s32.totalorder %s22_s24, %s22_s24 }
   0xd   :  { %p198_p3 = scmp.ne.s32.totalorder %s22_s24, %s197_s9  ;;  %p203_p5 = scmp.lt.s32.totalorder %s197_s9, %s197_s9 }
   0xf   :  { %p204_p6 = por %p203_p5, %p202_p4 }
  0x11   :  { %p205_p7 = pnand %p204_p6, %p198_p3 }
  0x13   :  { %208 = shalt.err (!%p205_p7)
}
  0x14   :  { %24 = dma.hbm_to_vmem [thread:$0]  %s322_s0, 64, %s22_s24, [#allocation4]  }
  0x15   :  { %s209_s14 = scalar_lea.hbm %s323_s1, 256 }
  0x16   :  { %p210_p8 = scmp.ne.s32.totalorder %s323_s1, %s209_s14  ;;  %p213_p9 = scmp.lt.u32.totalorder %s209_s14, %s323_s1 }
  0x18   :  { %p215_p10 = pnand %p213_p9, %p210_p8 }
  0x1a   :  { %218 = shalt.err (!%p215_p10)
}
  0x1b   :  { %s219_s19 = scalar_lea.vmem %s279_s26, 256  ;;  %p224_p12 = scmp.lt.s32.totalorder %s279_s26, %s279_s26 }
  0x1c   :  { %p220_p11 = scmp.ne.s32.totalorder %s279_s26, %s219_s19  ;;  %p225_p13 = scmp.lt.s32.totalorder %s219_s19, %s219_s19 }
  0x1e   :  { %p226_p0 = por %p225_p13, %p224_p12 }
  0x20   :  { %p227_p1 = pnand %p226_p0, %p220_p11 }
  0x22   :  { %230 = shalt.err (!%p227_p1)
}
  0x23   :  { %s237_s0 = smov 64   ;;  %s238_s20 = smov 4  }
  0x24   :  { %36 = dma.hbm_to_vmem [thread:$0]  %s323_s1, 256, %s279_s26, [#allocation6], %s237_s0, %s237_s0, %s238_s20  }
  0x25   :  { %231 = dma.done.wait [#allocation4], 64  }
  0x26   :  { %232 = vsyncadd [#allocation4], 4294967232 }
  0x27   :  { %233 = dma.done.wait [#allocation6], 256  }
  0x28   :  { %234 = vsyncadd [#allocation6], 4294967040  ;;  %v239_v1 = vmov 0.0   ;;  %vm240_vm0 = vmmov 0   ;;  %v181_v2 = vld [vmem:[#allocation5] sm:$0xff]   ;;  %v182_v3 = vld [vmem:[#allocation5 + $0x8] sm:$0xff]  }
  0x29   :  { %167 = vmatprep.subr.bf16.mxu0 %v239_v1  ;;  %171 = vmatprep.mubr.msk.bf16.mxu0 %vm240_vm0, %v239_v1  ;;  %v52_v4 = vld [vmem:[#allocation3] sm:$0xf]  ;;  %vm76_vm1 = vcmask 261120   ;;  %v157_v5 = vld [vmem:[%s324_s2] ss:$0 sm:$0xff]  ;;  %vm131_vm2 = vcmask 523264  }
  0x2a   :  { %168 = vmatpush3.bf16.msra.mxu0 %v181_v2  ;;  %v120_v7 = vld [vmem:[%s325_s3] sm:$0xff]  ;;  %vm149_vm3 = vcmask 7168  }
  0x2b   :  { %169 = vmatprep.subr.bf16.mxu0 %v239_v1  ;;  %v161_v13 = vld [vmem:[%s326_s4] ss:$0 sm:$0xff] }
  0x2c   :  { %v162_v17 = vld [vmem:[#allocation2] ss:$0 sm:$0xff] }
  0x2e   :  { %170 = vmatpush3.bf16.msra.mxu0 %v182_v3 }
  0x31   :  { %172 = vmatmul.mubr.msk.bf16.vlgmr.msra.gmra.mrb[0].mxu0 %vm76_vm1, %v52_v4 }
 0x104   :  { %v114_v6 = vpop.f32.mrb[0].mxu0 }
 0x105   :  { %v115_v8 = vadd.f32 %v157_v5, %v114_v6  ;;  %v173_v9 = vpop.f32.mrb[1].mxu0 }
 0x106   :  { %v117_v10 = vpop.f32.mrb[2].mxu0 }
 0x107   :  { %v121_v11 = vmul.f32 %v120_v7, %v115_v8  ;;  %v174_v12 = vpop.f32.mrb[3].mxu0 }
 0x109   :  { %v122_v14 = vmax.f32 %v121_v11, 0.0 }
 0x10b   :  { %v130_v15 = vmul.f32 %v161_v13, %v122_v14 }
 0x10d   :  { %v132_v16 = vsel %vm131_vm2, %v130_v15, 0.0 }
 0x10e   :  { %133 = vadd.xlane.f32.xlu0 %v132_v16 }
 0x19b   :  { %v134_v18 = vpop.xlane.xlu0 %133 }
 0x19c   :  { %v142_v19 = vadd.f32 %v162_v17, %v134_v18 }
 0x19e   :  { %v163_v20 = vmul.f32 -1.442695, %v142_v19 }
 0x1a0   :  { %183 = vpow2.f32 %v163_v20 }
 0x1aa   :  { %v184_v21 = vpop.eup %183 }
 0x1ab   :  { %v146_v22 = vadd.f32 1.0, %v184_v21 }
 0x1ad   :  { %185 = vrcp.f32 %v146_v22 }
 0x1b7   :  { %v186_v23 = vpop.eup %185 }
 0x1b8   :  { %150 = vst.msk [vmem:[%s328_s6] sm:$0xff] %vm149_vm3, %v186_v23 }
 0x1b9   :  { %155 = vsyncpa [#allocation4], 1 }
 0x1ba   :  { %156 = vsyncpa [#allocation6], 1 }

</bundles_post_ra>
